<compile_context>
chip_gen: v7x
topology: tpu7x:2x2x1
jax: 0.10.0
libtpu: 0.0.40
codegen_flags: <defaults>
</compile_context>

<pallas_src>
import jax
import jax.numpy as jnp
from jax import lax
from jax.experimental import pallas as pl
from jax.experimental.pallas import tpu as pltpu


def _make_supcon_kernel(mask_mode, *, inv_temp, temperature, scale_by_temperature):
    """Build the tiled SupCon kernel.

    mask_mode == "labels": a_ref = row labels [TM,1] int32, b_ref = col labels [1,TN] int32
    mask_mode == "mask"  : a_ref = mask tile [TM,TN] f32,   b_ref = diag(mask) [TM,1] f32
    """
    sqrt_inv_temp = float(inv_temp) ** 0.5

    def kernel(a_ref, b_ref, feat_r_ref, feat_c_ref,
               lossrow_ref, keep_ref,
               frn_ref, acc_e_ref, acc_pl_ref, acc_np_ref):
        j = pl.program_id(1)
        nj = pl.num_programs(1)

        # New row block: (re)normalize+scale the row features once, zero accumulators.
        @pl.when(j == 0)
        def _():
            fr = feat_r_ref[...].astype(jnp.float32)                       # [TM, D]
            nrm = jnp.sqrt(jnp.sum(fr * fr, axis=1, keepdims=True))
            frn_ref[...] = (fr * (sqrt_inv_temp / jnp.maximum(nrm, 1e-12))
                            ).astype(jnp.bfloat16)
            acc_e_ref[...] = jnp.zeros_like(acc_e_ref)
            acc_pl_ref[...] = jnp.zeros_like(acc_pl_ref)
            acc_np_ref[...] = jnp.zeros_like(acc_np_ref)

        # Column block: normalize + fold sqrt(1/T) + cast to bf16.
        fc = feat_c_ref[...].astype(jnp.float32)                           # [TN, D]
        nrm_c = jnp.sqrt(jnp.sum(fc * fc, axis=1, keepdims=True))
        fcn = (fc * (sqrt_inv_temp / jnp.maximum(nrm_c, 1e-12))).astype(jnp.bfloat16)

        frn = frn_ref[...]                                                 # [TM, D] bf16
        # Gram tile on the MXU, contracting the last dim of both operands
        # (no transpose); sqrt(1/T) on each side => dots already divided by T.
        dots = lax.dot_general(frn, fcn, (((1,), (1,)), ((), ())),
                               preferred_element_type=jnp.float32)         # [TM, TN]
        # Constant stabilizer: row max == self-similarity == 1/T for unit rows;
        # log-softmax is shift-invariant so the loss is unchanged.
        logits = dots - inv_temp
        e = jnp.exp(logits)

        if mask_mode == "labels":
            m = (a_ref[...] == b_ref[...]).astype(jnp.float32)             # [TM, TN]
        else:
            m = a_ref[...].astype(jnp.float32)                             # [TM, TN]

        acc_e_ref[...] += jnp.sum(e, axis=1, keepdims=True)
        acc_pl_ref[...] += jnp.sum(logits * m, axis=1, keepdims=True)
        acc_np_ref[...] += jnp.sum(m, axis=1, keepdims=True)

        # Last column block: apply diagonal corrections and emit per-row loss/keep.
        @pl.when(j == nj - 1)
        def _():
            frn_f32 = frn_ref[...].astype(jnp.float32)
            self_dot = jnp.sum(frn_f32 * frn_f32, axis=1, keepdims=True)   # ~ 1/T
            diag_logit = self_dot - inv_temp
            diag_exp = jnp.exp(diag_logit)

            if mask_mode == "labels":
                mdiag = 1.0                      # labels always match themselves
            else:
                mdiag = b_ref[...].astype(jnp.float32)                     # [TM, 1]

            # torch: denominator = sum(exp*(pos+neg)) = rowsum(exp) - mask_ii*exp_ii
            denom = acc_e_ref[...] - mdiag * diag_exp
            npos = acc_np_ref[...] - mdiag
            plog = acc_pl_ref[...] - mdiag * diag_logit
            # sum(pos * (logits - log(denom))) = plog - npos * log(denom)
            row_sum = plog - npos * jnp.log(denom)

            keep = (npos > 0.0).astype(jnp.float32)
            per_row = jnp.where(npos > 0.0,
                                row_sum / jnp.where(npos > 0.0, npos, 1.0),
                                0.0)
            loss_rows = -per_row
            if scale_by_temperature:
                loss_rows = loss_rows * temperature
            lossrow_ref[...] = loss_rows
            keep_ref[...] = keep

    return kernel


def _choose_tile(b):
    # 256-aligned tiles fill the 2x256^2 MXU on v6e/v7x; 128 keeps the 4x128^2
    # MXU on v5e full and divides more batch sizes.
    for t in (256, 128):
        if b % t == 0:
            return t
    # TODO(synk): pad + mask the batch instead of falling back to a single block
    # per axis when B is large and not a multiple of 128.
    return b


def supcon_loss(features, labels=None, mask=None, *, temperature=0.5,
                scale_by_temperature=True, block=None):
    """Pallas TPU implementation of SupConLoss.forward (returns the scalar loss)."""
    features = jnp.asarray(features).astype(jnp.float32)
    B, D = features.shape

    if labels is not None and mask is not None:
        raise ValueError("Cannot define both `labels` and `mask`")
    if labels is None and mask is None:
        # eye mask == every sample is its own (only) class member
        labels = jnp.arange(B, dtype=jnp.int32)

    if labels is not None:
        labels = jnp.asarray(labels).reshape(-1).astype(jnp.int32)
        if labels.shape[0] != B:
            raise ValueError("Num of labels does not match num of features")
        mode = "labels"
        a_arr = labels.reshape(B, 1)
        b_arr = labels.reshape(1, B)
    else:
        mode = "mask"
        mask = jnp.asarray(mask).astype(jnp.float32)
        a_arr = mask
        b_arr = jnp.diagonal(mask).reshape(B, 1).astype(jnp.float32)

    tm = tn = int(block) if block is not None else _choose_tile(B)
    assert B % tm == 0 and B % tn == 0, "block size must divide the batch size"
    ni, nj = B // tm, B // tn

    inv_temp = 1.0 / float(temperature)
    kernel = _make_supcon_kernel(mode, inv_temp=inv_temp,
                                 temperature=float(temperature),
                                 scale_by_temperature=bool(scale_by_temperature))

    if mode == "labels":
        a_spec = pl.BlockSpec((tm, 1), lambda i, j: (i, 0))     # row labels
        b_spec = pl.BlockSpec((1, tn), lambda i, j: (0, j))     # col labels
        mask_bytes = 8 * B
    else:
        a_spec = pl.BlockSpec((tm, tn), lambda i, j: (i, j))    # mask tile
        b_spec = pl.BlockSpec((tm, 1), lambda i, j: (i, 0))     # diag(mask)
        mask_bytes = 4 * B * B + 4 * B

    grid_spec = pltpu.PrefetchScalarGridSpec(
        num_scalar_prefetch=0,
        grid=(ni, nj),
        in_specs=[
            a_spec,
            b_spec,
            pl.BlockSpec((tm, D), lambda i, j: (i, 0)),   # row-side features
            pl.BlockSpec((tn, D), lambda i, j: (j, 0)),   # col-side features
        ],
        out_specs=[
            pl.BlockSpec((tm, 1), lambda i, j: (i, 0)),   # per-row loss
            pl.BlockSpec((tm, 1), lambda i, j: (i, 0)),   # per-row keep flag
        ],
        scratch_shapes=[
            pltpu.VMEM((tm, D), jnp.bfloat16),   # cached normalized row block
            pltpu.VMEM((tm, 1), jnp.float32),    # rowsum(exp)
            pltpu.VMEM((tm, 1), jnp.float32),    # rowsum(logits * mask)
            pltpu.VMEM((tm, 1), jnp.float32),    # rowsum(mask)
        ],
    )

    cost = pl.CostEstimate(
        flops=2 * B * B * D,
        transcendentals=B * B,
        bytes_accessed=4 * B * D * (ni + 1) + mask_bytes + 8 * B,
    )

    loss_rows, keep = pl.pallas_call(
        kernel,
        out_shape=(jax.ShapeDtypeStruct((B, 1), jnp.float32),
                   jax.ShapeDtypeStruct((B, 1), jnp.float32)),
        grid_spec=grid_spec,
        compiler_params=pltpu.CompilerParams(
            dimension_semantics=("parallel", "arbitrary"),
            vmem_limit_bytes=48 * 1024 * 1024,
        ),
        cost_estimate=cost,
    )(a_arr, b_arr, features, features)

    # Tiny O(B) epilogue: mean over rows that have at least one positive
    # (NaN when no row has positives, matching torch's mean of an empty tensor).
    return jnp.sum(loss_rows) / jnp.sum(keep)


def _supcon_loss_ref(features, labels, *, temperature=0.5, scale_by_temperature=True):
    """Pure-JAX f32 reference mirroring the torch code, for a sanity check."""
    f = features / jnp.maximum(
        jnp.sqrt(jnp.sum(features * features, axis=1, keepdims=True)), 1e-12)
    B = f.shape[0]
    mask = (labels.reshape(-1, 1) == labels.reshape(1, -1)).astype(jnp.float32)
    dots = f @ f.T / temperature
    logits = dots - jnp.max(dots, axis=1, keepdims=True)
    exp_logits = jnp.exp(logits)
    eye = jnp.eye(B, dtype=jnp.float32)
    pos = mask * (1.0 - eye)
    neg = 1.0 - mask
    num_pos = jnp.sum(pos, axis=1)
    denom = (jnp.sum(exp_logits * neg, axis=1, keepdims=True)
             + jnp.sum(exp_logits * pos, axis=1, keepdims=True))
    log_probs = logits - jnp.log(denom)
    row_sum = jnp.sum(log_probs * pos, axis=1)
    keep = num_pos > 0
    per_row = jnp.where(keep, row_sum / jnp.where(keep, num_pos, 1.0), 0.0)
    loss_rows = -per_row
    if scale_by_temperature:
        loss_rows = loss_rows * temperature
    return jnp.sum(loss_rows) / jnp.sum(keep.astype(jnp.float32))


if __name__ == "__main__":
    key = jax.random.PRNGKey(0)
    kf, kl, kf2, kl2 = jax.random.split(key, 4)

    # Small case (single block, full-array BlockSpecs).
    B, D = 8, 32
    features = jax.random.normal(kf, (B, D), dtype=jnp.float32)
    labels = jax.random.randint(kl, (B,), 0, 3, dtype=jnp.int32)
    loss = jax.block_until_ready(
        supcon_loss(features, labels=labels, temperature=0.5,
                    scale_by_temperature=True))
    ref = _supcon_loss_ref(features, labels, temperature=0.5,
                           scale_by_temperature=True)
    # bf16 Gram matmul loosens the tolerance relative to the f32 reference.
    assert jnp.allclose(loss, ref, atol=5e-2, rtol=5e-2), (loss, ref)

    # Explicit-mask path must agree with the labels path.
    mask = (labels[:, None] == labels[None, :]).astype(jnp.float32)
    loss_m = jax.block_until_ready(
        supcon_loss(features, mask=mask, temperature=0.5,
                    scale_by_temperature=True))
    assert jnp.allclose(loss_m, loss, atol=1e-5, rtol=1e-5), (loss_m, loss)

    # Larger case exercising the (parallel, arbitrary) 2x2 grid with 128-tiles.
    B2, D2 = 256, 64
    features2 = jax.random.normal(kf2, (B2, D2), dtype=jnp.float32)
    labels2 = jax.random.randint(kl2, (B2,), 0, 8, dtype=jnp.int32)
    loss2 = jax.block_until_ready(
        supcon_loss(features2, labels=labels2, temperature=0.5,
                    scale_by_temperature=True, block=128))
    ref2 = _supcon_loss_ref(features2, labels2, temperature=0.5,
                            scale_by_temperature=True)
    assert jnp.allclose(loss2, ref2, atol=5e-2, rtol=5e-2), (loss2, ref2)

    print("KERNEL_OK")
</pallas_src>

<mosaic_0001>
module attributes {stable_mosaic.version = 11 : i64} {
  func.func @kernel(%arg0: i32, %arg1: i32, %arg2: memref<8x1xi32, #tpu.memory_space<vmem>>, %arg3: memref<1x8xi32, #tpu.memory_space<vmem>>, %arg4: memref<8x32xf32, #tpu.memory_space<vmem>>, %arg5: memref<8x32xf32, #tpu.memory_space<vmem>>, %arg6: memref<8x1xf32, #tpu.memory_space<vmem>>, %arg7: memref<8x1xf32, #tpu.memory_space<vmem>>, %arg8: memref<8x32xbf16, #tpu.memory_space<vmem>>, %arg9: memref<8x1xf32, #tpu.memory_space<vmem>>, %arg10: memref<8x1xf32, #tpu.memory_space<vmem>>, %arg11: memref<8x1xf32, #tpu.memory_space<vmem>>) attributes {dimension_semantics = [#tpu.dimension_semantics<parallel>, #tpu.dimension_semantics<arbitrary>], iteration_bounds = array<i64: 1, 1>, scalar_prefetch = 0 : i64, scratch_operands = 4 : i64, tpu.core_type = #tpu.core_type<tc>, window_params = [{transform_indices = @transform_0, window_bounds = array<i64: 8, 1>}, {transform_indices = @transform_1, window_bounds = array<i64: 1, 8>}, {transform_indices = @transform_2, window_bounds = array<i64: 8, 32>}, {transform_indices = @transform_3, window_bounds = array<i64: 8, 32>}, {transform_indices = @transform_4, window_bounds = array<i64: 8, 1>}, {transform_indices = @transform_5, window_bounds = array<i64: 8, 1>}]} {
    %c0_i32 = arith.constant 0 : i32
    %0 = arith.cmpi eq, %arg1, %c0_i32 : i32
    %1 = arith.extui %0 : i1 to i32
    %c0_i32_0 = arith.constant 0 : i32
    %2 = arith.cmpi ne, %1, %c0_i32_0 : i32
    scf.if %2 {
      %c0_29 = arith.constant 0 : index
      %c0_30 = arith.constant 0 : index
      %46 = vector.load %arg4[%c0_29, %c0_30] : memref<8x32xf32, #tpu.memory_space<vmem>>, vector<8x32xf32>
      %47 = arith.mulf %46, %46 : vector<8x32xf32>
      %cst_31 = arith.constant dense<0.000000e+00> : vector<8xf32>
      %48 = vector.multi_reduction <add>, %47, %cst_31 [1] : vector<8x32xf32> to vector<8xf32>
      %49 = vector.shape_cast %48 : vector<8xf32> to vector<8x1xf32>
      %50 = math.sqrt %49 : vector<8x1xf32>
      %cst_32 = arith.constant 9.99999996E-13 : f32
      %51 = vector.broadcast %cst_32 : f32 to vector<8x1xf32>
      %52 = arith.maximumf %50, %51 : vector<8x1xf32>
      %cst_33 = arith.constant 1.41421354 : f32
      %53 = vector.broadcast %cst_33 : f32 to vector<8x1xf32>
      %54 = arith.divf %53, %52 : vector<8x1xf32>
      %55 = vector.broadcast %54 : vector<8x1xf32> to vector<8x32xf32>
      %56 = arith.mulf %46, %55 : vector<8x32xf32>
      %57 = arith.truncf %56 : vector<8x32xf32> to vector<8x32xbf16>
      %c0_34 = arith.constant 0 : index
      %c0_35 = arith.constant 0 : index
      %58 = vector.load %arg8[%c0_34, %c0_35] : memref<8x32xbf16, #tpu.memory_space<vmem>>, vector<8x32xbf16>
      tpu.vector_store %arg8[%c0_34, %c0_35], %57 {strides = array<i32>} : memref<8x32xbf16, #tpu.memory_space<vmem>>, vector<8x32xbf16>,
      %cst_36 = arith.constant 0.000000e+00 : f32
      %59 = vector.broadcast %cst_36 : f32 to vector<8x1xf32>
      %c0_37 = arith.constant 0 : index
      %c0_38 = arith.constant 0 : index
      %60 = vector.load %arg9[%c0_37, %c0_38] : memref<8x1xf32, #tpu.memory_space<vmem>>, vector<8x1xf32>
      tpu.vector_store %arg9[%c0_37, %c0_38], %59 {strides = array<i32>} : memref<8x1xf32, #tpu.memory_space<vmem>>, vector<8x1xf32>,
      %cst_39 = arith.constant 0.000000e+00 : f32
      %61 = vector.broadcast %cst_39 : f32 to vector<8x1xf32>
      %c0_40 = arith.constant 0 : index
      %c0_41 = arith.constant 0 : index
      %62 = vector.load %arg10[%c0_40, %c0_41] : memref<8x1xf32, #tpu.memory_space<vmem>>, vector<8x1xf32>
      tpu.vector_store %arg10[%c0_40, %c0_41], %61 {strides = array<i32>} : memref<8x1xf32, #tpu.memory_space<vmem>>, vector<8x1xf32>,
      %cst_42 = arith.constant 0.000000e+00 : f32
      %63 = vector.broadcast %cst_42 : f32 to vector<8x1xf32>
      %c0_43 = arith.constant 0 : index
      %c0_44 = arith.constant 0 : index
      %64 = vector.load %arg11[%c0_43, %c0_44] : memref<8x1xf32, #tpu.memory_space<vmem>>, vector<8x1xf32>
      tpu.vector_store %arg11[%c0_43, %c0_44], %63 {strides = array<i32>} : memref<8x1xf32, #tpu.memory_space<vmem>>, vector<8x1xf32>,
    } else {
    }
    %c0 = arith.constant 0 : index
    %c0_1 = arith.constant 0 : index
    %3 = vector.load %arg5[%c0, %c0_1] : memref<8x32xf32, #tpu.memory_space<vmem>>, vector<8x32xf32>
    %4 = arith.mulf %3, %3 : vector<8x32xf32>
    %cst = arith.constant dense<0.000000e+00> : vector<8xf32>
    %5 = vector.multi_reduction <add>, %4, %cst [1] : vector<8x32xf32> to vector<8xf32>
    %6 = vector.shape_cast %5 : vector<8xf32> to vector<8x1xf32>
    %7 = math.sqrt %6 : vector<8x1xf32>
    %cst_2 = arith.constant 9.99999996E-13 : f32
    %8 = vector.broadcast %cst_2 : f32 to vector<8x1xf32>
    %9 = arith.maximumf %7, %8 : vector<8x1xf32>
    %cst_3 = arith.constant 1.41421354 : f32
    %10 = vector.broadcast %cst_3 : f32 to vector<8x1xf32>
    %11 = arith.divf %10, %9 : vector<8x1xf32>
    %12 = vector.broadcast %11 : vector<8x1xf32> to vector<8x32xf32>
    %13 = arith.mulf %3, %12 : vector<8x32xf32>
    %14 = arith.truncf %13 : vector<8x32xf32> to vector<8x32xbf16>
    %c0_4 = arith.constant 0 : index
    %c0_5 = arith.constant 0 : index
    %15 = vector.load %arg8[%c0_4, %c0_5] : memref<8x32xbf16, #tpu.memory_space<vmem>>, vector<8x32xbf16>
    %cst_6 = arith.constant dense<0.000000e+00> : vector<8x8xf32>
    %16 = tpu.matmul %15, %14, %cst_6 {dimension_numbers = #tpu.dot_dimension_numbers<[1], [1], [0], [0], [0, 0, 1, 0], [], []>} : vector<8x32xbf16>, vector<8x32xbf16>, vector<8x8xf32> -> vector<8x8xf32>
    %cst_7 = arith.constant 2.000000e+00 : f32
    %17 = vector.broadcast %cst_7 : f32 to vector<8x8xf32>
    %18 = arith.subf %16, %17 : vector<8x8xf32>
    %19 = math.exp %18 : vector<8x8xf32>
    %c0_8 = arith.constant 0 : index
    %c0_9 = arith.constant 0 : index
    %20 = vector.load %arg2[%c0_8, %c0_9] : memref<8x1xi32, #tpu.memory_space<vmem>>, vector<8x1xi32>
    %c0_10 = arith.constant 0 : index
    %c0_11 = arith.constant 0 : index
    %21 = vector.load %arg3[%c0_10, %c0_11] : memref<1x8xi32, #tpu.memory_space<vmem>>, vector<1x8xi32>
    %22 = vector.broadcast %20 : vector<8x1xi32> to vector<8x8xi32>
    %23 = vector.broadcast %21 : vector<1x8xi32> to vector<8x8xi32>
    %24 = arith.cmpi eq, %22, %23 : vector<8x8xi32>
    %25 = arith.extui %24 : vector<8x8xi1> to vector<8x8xi32>
    %26 = arith.sitofp %25 : vector<8x8xi32> to vector<8x8xf32>
    %c0_12 = arith.constant 0 : index
    %c0_13 = arith.constant 0 : index
    %27 = vector.load %arg9[%c0_12, %c0_13] : memref<8x1xf32, #tpu.memory_space<vmem>>, vector<8x1xf32>
    %cst_14 = arith.constant dense<0.000000e+00> : vector<8xf32>
    %28 = vector.multi_reduction <add>, %19, %cst_14 [1] : vector<8x8xf32> to vector<8xf32>
    %29 = vector.shape_cast %28 : vector<8xf32> to vector<8x1xf32>
    %30 = arith.addf %27, %29 : vector<8x1xf32>
    %c0_15 = arith.constant 0 : index
    %c0_16 = arith.constant 0 : index
    %31 = vector.load %arg9[%c0_15, %c0_16] : memref<8x1xf32, #tpu.memory_space<vmem>>, vector<8x1xf32>
    tpu.vector_store %arg9[%c0_15, %c0_16], %30 {strides = array<i32>} : memref<8x1xf32, #tpu.memory_space<vmem>>, vector<8x1xf32>,
    %c0_17 = arith.constant 0 : index
    %c0_18 = arith.constant 0 : index
    %32 = vector.load %arg10[%c0_17, %c0_18] : memref<8x1xf32, #tpu.memory_space<vmem>>, vector<8x1xf32>
    %33 = arith.mulf %18, %26 : vector<8x8xf32>
    %cst_19 = arith.constant dense<0.000000e+00> : vector<8xf32>
    %34 = vector.multi_reduction <add>, %33, %cst_19 [1] : vector<8x8xf32> to vector<8xf32>
    %35 = vector.shape_cast %34 : vector<8xf32> to vector<8x1xf32>
    %36 = arith.addf %32, %35 : vector<8x1xf32>
    %c0_20 = arith.constant 0 : index
    %c0_21 = arith.constant 0 : index
    %37 = vector.load %arg10[%c0_20, %c0_21] : memref<8x1xf32, #tpu.memory_space<vmem>>, vector<8x1xf32>
    tpu.vector_store %arg10[%c0_20, %c0_21], %36 {strides = array<i32>} : memref<8x1xf32, #tpu.memory_space<vmem>>, vector<8x1xf32>,
    %c0_22 = arith.constant 0 : index
    %c0_23 = arith.constant 0 : index
    %38 = vector.load %arg11[%c0_22, %c0_23] : memref<8x1xf32, #tpu.memory_space<vmem>>, vector<8x1xf32>
    %cst_24 = arith.constant dense<0.000000e+00> : vector<8xf32>
    %39 = vector.multi_reduction <add>, %26, %cst_24 [1] : vector<8x8xf32> to vector<8xf32>
    %40 = vector.shape_cast %39 : vector<8xf32> to vector<8x1xf32>
    %41 = arith.addf %38, %40 : vector<8x1xf32>
    %c0_25 = arith.constant 0 : index
    %c0_26 = arith.constant 0 : index
    %42 = vector.load %arg11[%c0_25, %c0_26] : memref<8x1xf32, #tpu.memory_space<vmem>>, vector<8x1xf32>
    tpu.vector_store %arg11[%c0_25, %c0_26], %41 {strides = array<i32>} : memref<8x1xf32, #tpu.memory_space<vmem>>, vector<8x1xf32>,
    %c0_i32_27 = arith.constant 0 : i32
    %43 = arith.cmpi eq, %arg1, %c0_i32_27 : i32
    %44 = arith.extui %43 : i1 to i32
    %c0_i32_28 = arith.constant 0 : i32
    %45 = arith.cmpi ne, %44, %c0_i32_28 : i32
    scf.if %45 {
      %c0_29 = arith.constant 0 : index
      %c0_30 = arith.constant 0 : index
      %46 = vector.load %arg8[%c0_29, %c0_30] : memref<8x32xbf16, #tpu.memory_space<vmem>>, vector<8x32xbf16>
      %47 = arith.extf %46 : vector<8x32xbf16> to vector<8x32xf32>
      %48 = arith.mulf %47, %47 : vector<8x32xf32>
      %cst_31 = arith.constant dense<0.000000e+00> : vector<8xf32>
      %49 = vector.multi_reduction <add>, %48, %cst_31 [1] : vector<8x32xf32> to vector<8xf32>
      %50 = vector.shape_cast %49 : vector<8xf32> to vector<8x1xf32>
      %cst_32 = arith.constant 2.000000e+00 : f32
      %51 = vector.broadcast %cst_32 : f32 to vector<8x1xf32>
      %52 = arith.subf %50, %51 : vector<8x1xf32>
      %53 = math.exp %52 : vector<8x1xf32>
      %c0_33 = arith.constant 0 : index
      %c0_34 = arith.constant 0 : index
      %54 = vector.load %arg9[%c0_33, %c0_34] : memref<8x1xf32, #tpu.memory_space<vmem>>, vector<8x1xf32>
      %cst_35 = arith.constant 1.000000e+00 : f32
      %55 = vector.broadcast %cst_35 : f32 to vector<8x1xf32>
      %56 = arith.mulf %55, %53 : vector<8x1xf32>
      %57 = arith.subf %54, %56 : vector<8x1xf32>
      %c0_36 = arith.constant 0 : index
      %c0_37 = arith.constant 0 : index
      %58 = vector.load %arg11[%c0_36, %c0_37] : memref<8x1xf32, #tpu.memory_space<vmem>>, vector<8x1xf32>
      %cst_38 = arith.constant 1.000000e+00 : f32
      %59 = vector.broadcast %cst_38 : f32 to vector<8x1xf32>
      %60 = arith.subf %58, %59 : vector<8x1xf32>
      %c0_39 = arith.constant 0 : index
      %c0_40 = arith.constant 0 : index
      %61 = vector.load %arg10[%c0_39, %c0_40] : memref<8x1xf32, #tpu.memory_space<vmem>>, vector<8x1xf32>
      %cst_41 = arith.constant 1.000000e+00 : f32
      %62 = vector.broadcast %cst_41 : f32 to vector<8x1xf32>
      %63 = arith.mulf %62, %52 : vector<8x1xf32>
      %64 = arith.subf %61, %63 : vector<8x1xf32>
      %65 = math.log %57 : vector<8x1xf32>
      %66 = arith.mulf %60, %65 : vector<8x1xf32>
      %67 = arith.subf %64, %66 : vector<8x1xf32>
      %cst_42 = arith.constant 0.000000e+00 : f32
      %68 = vector.broadcast %cst_42 : f32 to vector<8x1xf32>
      %69 = arith.cmpf ogt, %60, %68 : vector<8x1xf32>
      %70 = arith.extui %69 : vector<8x1xi1> to vector<8x1xi32>
      %71 = arith.sitofp %70 : vector<8x1xi32> to vector<8x1xf32>
      %cst_43 = arith.constant 0.000000e+00 : f32
      %72 = vector.broadcast %cst_43 : f32 to vector<8x1xf32>
      %73 = arith.cmpf ogt, %60, %72 : vector<8x1xf32>
      %cst_44 = arith.constant 0.000000e+00 : f32
      %74 = vector.broadcast %cst_44 : f32 to vector<8x1xf32>
      %75 = arith.cmpf ogt, %60, %74 : vector<8x1xf32>
      %cst_45 = arith.constant 1.000000e+00 : f32
      %76 = vector.broadcast %cst_45 : f32 to vector<8x1xf32>
      %77 = arith.select %75, %60, %76 : vector<8x1xi1>, vector<8x1xf32>
      %78 = arith.divf %67, %77 : vector<8x1xf32>
      %cst_46 = arith.constant 0.000000e+00 : f32
      %79 = vector.broadcast %cst_46 : f32 to vector<8x1xf32>
      %80 = arith.select %73, %78, %79 : vector<8x1xi1>, vector<8x1xf32>
      %cst_47 = arith.constant 0.000000e+00 : f32
      %81 = vector.broadcast %cst_47 : f32 to vector<8x1xf32>
      %82 = arith.subf %81, %80 : vector<8x1xf32>
      %cst_48 = arith.constant 5.000000e-01 : f32
      %83 = vector.broadcast %cst_48 : f32 to vector<8x1xf32>
      %84 = arith.mulf %82, %83 : vector<8x1xf32>
      %c0_49 = arith.constant 0 : index
      %c0_50 = arith.constant 0 : index
      %85 = vector.load %arg6[%c0_49, %c0_50] : memref<8x1xf32, #tpu.memory_space<vmem>>, vector<8x1xf32>
      tpu.vector_store %arg6[%c0_49, %c0_50], %84 {strides = array<i32>} : memref<8x1xf32, #tpu.memory_space<vmem>>, vector<8x1xf32>,
      %c0_51 = arith.constant 0 : index
      %c0_52 = arith.constant 0 : index
      %86 = vector.load %arg7[%c0_51, %c0_52] : memref<8x1xf32, #tpu.memory_space<vmem>>, vector<8x1xf32>
      tpu.vector_store %arg7[%c0_51, %c0_52], %71 {strides = array<i32>} : memref<8x1xf32, #tpu.memory_space<vmem>>, vector<8x1xf32>,
    } else {
    }
    return
  }
  func.func @transform_0(%arg0: i32, %arg1: i32) -> (i32, i32) {
    %c0_i32 = arith.constant 0 : i32
    %c0_i32_0 = arith.constant 0 : i32
    return %arg0, %c0_i32 : i32, i32
  }
  func.func @transform_1(%arg0: i32, %arg1: i32) -> (i32, i32) {
    %c0_i32 = arith.constant 0 : i32
    %c0_i32_0 = arith.constant 0 : i32
    return %c0_i32, %arg1 : i32, i32
  }
  func.func @transform_2(%arg0: i32, %arg1: i32) -> (i32, i32) {
    %c0_i32 = arith.constant 0 : i32
    %c0_i32_0 = arith.constant 0 : i32
    return %arg0, %c0_i32 : i32, i32
  }
  func.func @transform_3(%arg0: i32, %arg1: i32) -> (i32, i32) {
    %c0_i32 = arith.constant 0 : i32
    %c0_i32_0 = arith.constant 0 : i32
    return %arg1, %c0_i32 : i32, i32
  }
  func.func @transform_4(%arg0: i32, %arg1: i32) -> (i32, i32) {
    %c0_i32 = arith.constant 0 : i32
    %c0_i32_0 = arith.constant 0 : i32
    return %arg0, %c0_i32 : i32, i32
  }
  func.func @transform_5(%arg0: i32, %arg1: i32) -> (i32, i32) {
    %c0_i32 = arith.constant 0 : i32
    %c0_i32_0 = arith.constant 0 : i32
    return %arg0, %c0_i32 : i32, i32
  }
}

</mosaic_0001>

<bundles_post_ra>
// kernel: tpu_custom_call.1
= control target key start
LH: loop header
LB: loop body
LE: loop exit
PB: predicated region body
PF: predicated region fallthrough
CT: control target
= control target key end

     0   :  { %11 = vsyncpa [#allocation7], 0  ;;  %s264_s18 = smov [#allocation6]   ;;  %s345_s0 = inlined_call_operand.vmem [shape: s32[8,1], index: 0, kind: input, shape index: {}]   ;;  %s346_s1 = inlined_call_operand.hbm [shape: s32[1,8], index: 1, kind: input, shape index: {}]   ;;  %s347_s2 = inlined_call_operand.vmem [shape: f32[8,32], index: 2, kind: input, shape index: {}]   ;;  %s348_s3 = inlined_call_operand.vmem [shape: f32[8,32], index: 3, kind: input, shape index: {}]   ;;  %s349_s4 = inlined_call_operand.vmem [shape: f32[8,1], index: 4, kind: output, shape index: {0}]   ;;  %s350_s5 = inlined_call_operand.vmem [shape: f32[8,1], index: 5, kind: output, shape index: {1}]  }
   0x1   :  { %s20_s19 = sshll.u32 %s264_s18, 4  ;;  %s240_s22 = scalar_lea.hbm %s346_s1, 16  ;;  %s21_s19 = int_to_ptr.vmem [resolvable:$true] %s20_s19 }
   0x2   :  { %p241_p0 = scmp.ne.s32.totalorder %s346_s1, %s240_s22  ;;  %p244_p1 = scmp.lt.u32.totalorder %s240_s22, %s346_s1 }
   0x4   :  { %p246_p2 = pnand %p244_p1, %p241_p0 }
   0x6   :  { %249 = shalt.err (!%p246_p2)
}
   0x7   :  { %s250_s27 = scalar_lea.vmem %s21_s19, 16  ;;  %s254_s28 = scalar_lea.vmem %s21_s19, 32 }
   0x8   :  { %p251_p3 = scmp.ne.s32.totalorder %s21_s19, %s250_s27  ;;  %p255_p4 = scmp.lt.s32.totalorder %s21_s19, %s21_s19 }
   0x9   :  { %p256_p5 = scmp.lt.s32.totalorder %s254_s28, %s250_s27 }
   0xb   :  { %p257_p6 = por %p256_p5, %p255_p4 }
   0xd   :  { %p258_p7 = pnand %p257_p6, %p251_p3 }
   0xf   :  { %261 = shalt.err (!%p258_p7)
}
  0x10   :  { %23 = dma.hbm_to_vmem [thread:$0]  %s346_s1, 16, %s21_s19, [#allocation7]  }
  0x11   :  { %262 = dma.done.wait [#allocation7], 16  }
  0x12   :  { %263 = vsyncadd [#allocation7], 4294967280  ;;  %v36_v0 = vld [vmem:[%s347_s2] sm:$0xff]  ;;  %vm38_vm0 = vcmask 261120   ;;  %v265_v6 = vmov 0   ;;  %v266_v8 = vmov 0.0  }
  0x13   :  { %v60_v1 = vld [vmem:[%s348_s3] sm:$0xff]  ;;  %v37_v2 = vmul.f32 %v36_v0, %v36_v0  ;;  %222 = vset.pattern.permute.xlu1 %v265_v6  ;;  %223 = vset.pattern.permute.xlu0 %v265_v6  ;;  %vm267_vm1 = vmmov 0   ;;  %vm54_vm6 = vcmask 257024   ;;  %vm56_vm7 = vcmask 7168   ;;  %v205_v43 = vld [vmem:[#allocation6] ss:$0 sm:$0xff] }
  0x14   :  { %v61_v3 = vmul.f32 %v60_v1, %v60_v1  ;;  %v128_v7 = vld [vmem:[%s345_s0] sm:$0xff]  ;;  %212 = vmatprep.subr.bf16.mxu0 %v266_v8  ;;  %214 = vmatprep.mubr.msk.bf16.mxu0 %vm267_vm1, %v266_v8  ;;  %57 = vst.msk [vmem:[#allocation3] sm:$0xff] %vm56_vm7, %v266_v8  ;;  %58 = vst.msk [vmem:[#allocation4] sm:$0xff] %vm56_vm7, %v266_v8  ;;  %vm141_vm9 = vcmask 64512  }
  0x15   :  { %v39_v4 = vsel %vm38_vm0, %v37_v2, 0.0  ;;  %131 = vperm.xlu1 %222, %v128_v7   ;;  %59 = vst.msk [vmem:[#allocation5] sm:$0xff] %vm56_vm7, %v266_v8 }
  0x16   :  { %40 = vadd.xlane.f32.xlu0 %v39_v4  ;;  %v63_v5 = vsel %vm38_vm0, %v61_v3, 0.0 }
  0x1a   :  { %64 = vadd.xlane.f32.xlu0 %v63_v5 }
  0x1b   :  { %v140_v54 = vld [vmem:[#allocation3] sm:$0xff]  ;;  %v148_v60 = vld [vmem:[#allocation4] sm:$0xff] }
  0x1c   :  { %v155_v57 = vld [vmem:[#allocation5] sm:$0xff] }
  0x94   :  { %v132_v44 = vpop.permute.xlu1 %131 }
  0x95   :  { %vm137_vm8 = vcmp.eq.s32.totalorder %v132_v44, %v205_v43 }
  0x96   :  { %v206_v47 = vsel %vm137_vm8, 1.0, %v266_v8 }
  0x97   :  { %v156_v48 = vsel %vm141_vm9, %v206_v47, 0.0 }
  0xa3   :  { %v41_v9 = vpop.xlane.xlu0 %40 }
  0xa4   :  { %224 = vrsqrt.f32 %v41_v9  ;;  %vm44_vm2 = vcmp.eq.f32.partialorder %v41_v9, inf  ;;  %v47_v13 = vand.u32 2147483648, %v41_v9  ;;  %vm46_vm3 = vcmp.eq.f32.partialorder %v41_v9, 0.0 }
  0xa7   :  { %v65_v10 = vpop.xlane.xlu0 %64 }
  0xa8   :  { %226 = vrsqrt.f32 %v65_v10  ;;  %vm68_vm4 = vcmp.eq.f32.partialorder %v65_v10, inf  ;;  %v71_v19 = vand.u32 2147483648, %v65_v10  ;;  %vm70_vm5 = vcmp.eq.f32.partialorder %v65_v10, 0.0 }
  0xae   :  { %v225_v11 = vpop.eup %224 }
  0xaf   :  { %v43_v12 = vmul.f32 %v225_v11, %v41_v9 }
  0xb1   :  { %v45_v14 = vsel %vm44_vm2, %v41_v9, %v43_v12 }
  0xb2   :  { %v227_v15 = vpop.eup %226  ;;  %v48_v16 = vsel %vm46_vm3, %v47_v13, %v45_v14 }
  0xb3   :  { %v49_v17 = vmax.f32 %v48_v16, 1e-12  ;;  %v67_v18 = vmul.f32 %v227_v15, %v65_v10 }
  0xb5   :  { %228 = vrcp.f32 %v49_v17  ;;  %v69_v20 = vsel %vm68_vm4, %v65_v10, %v67_v18 }
  0xb6   :  { %v72_v21 = vsel %vm70_vm5, %v71_v19, %v69_v20 }
  0xb7   :  { %v73_v22 = vmax.f32 %v72_v21, 1e-12 }
  0xb9   :  { %230 = vrcp.f32 %v73_v22 }
  0xbf   :  { %v229_v23 = vpop.eup %228 }
  0xc0   :  { %v51_v24 = vmul.f32 1.4142135, %v229_v23 }
  0xc2   :  { %v52_v25 = vmul.f32 %v51_v24, %v36_v0 }
  0xc3   :  { %v231_v26 = vpop.eup %230 }
  0xc4   :  { %v53_v27 = vpack.c.bf16 %v52_v25, %v52_v25  ;;  %v75_v28 = vmul.f32 1.4142135, %v231_v26 }
  0xc6   :  { %55 = vst.msk [vmem:[#allocation2] sm:$0xf] %vm54_vm6, %v53_v27  ;;  %v76_v29 = vmul.f32 %v75_v28, %v60_v1 }
  0xc8   :  { %v77_v30 = vpack.c.bf16 %v76_v29, %v76_v29 }
  0xca   :  { %v83_v31 = vsel %vm38_vm0, %v77_v30, 0 }
  0xcb   :  { %213 = vmatpush3.bf16.xpose.msra.mxu0 %v83_v31 }
  0xcd   :  { %v164_v32 = vld [vmem:[#allocation2] sm:$0xf] }
  0xce   :  { %v165_v33 = vunpack.c.l.bf16 %v164_v32  ;;  %v78_v35 = vld [vmem:[#allocation2] sm:$0xf] }
  0xd0   :  { %v166_v34 = vmul.f32 %v165_v33, %v165_v33 }
  0xd2   :  { %215 = vmatmul.mubr.msk.bf16.vlgmr.msra.gmra.mrb[0].mxu0 %vm38_vm0, %v78_v35  ;;  %v167_v36 = vsel %vm38_vm0, %v166_v34, 0.0 }
  0xd3   :  { %168 = vadd.xlane.f32.xlu1 %v167_v36 }
 0x160   :  { %v169_v51 = vpop.xlane.xlu1 %168 }
 0x161   :  { %v207_v52 = vadd.f32 -2.0, %v169_v51 }
 0x163   :  { %v171_v53 = vmul.f32 1.442695, %v207_v52 }
 0x1a5   :  { %v119_v37 = vpop.f32.mrb[0].mxu0 }
 0x1a6   :  { %v204_v38 = vadd.f32 -2.0, %v119_v37  ;;  %v216_v39 = vpop.f32.mrb[1].mxu0 }
 0x1a7   :  { %v122_v40 = vpop.f32.mrb[2].mxu0 }
 0x1a8   :  { %v126_v41 = vmul.f32 1.442695, %v204_v38  ;;  %v217_v42 = vpop.f32.mrb[3].mxu0  ;;  %v149_v49 = vmul.f32 %v206_v47, %v204_v38 }
 0x1aa   :  { %232 = vpow2.f32 %v126_v41  ;;  %v150_v50 = vsel %vm141_vm9, %v149_v49, 0.0 }
 0x1ab   :  { %234 = vpow2.f32 %v171_v53 }
 0x1b4   :  { %v233_v45 = vpop.eup %232 }
 0x1b5   :  { %v142_v46 = vsel %vm141_vm9, %v233_v45, 0.0  ;;  %v235_v63 = vpop.eup %234 }
 0x1b6   :  { %143 = vadd.xlane.f32.xlu0 %v142_v46 }
 0x1ba   :  { %157 = vadd.xlane.f32.xlu0 %v156_v48 }
 0x1be   :  { %151 = vadd.xlane.f32.xlu0 %v150_v50 }
 0x243   :  { %v144_v55 = vpop.xlane.xlu0 %143 }
 0x244   :  { %v145_v56 = vadd.f32 %v144_v55, %v140_v54 }
 0x246   :  { %147 = vst.msk [vmem:[#allocation3] sm:$0xff] %vm56_vm7, %v145_v56 }
 0x247   :  { %v158_v58 = vpop.xlane.xlu0 %157 }
 0x248   :  { %v159_v59 = vadd.f32 %v158_v58, %v155_v57 }
 0x24a   :  { %160 = vst.msk [vmem:[#allocation5] sm:$0xff] %vm56_vm7, %v159_v59 }
 0x24b   :  { %v152_v61 = vpop.xlane.xlu0 %151 }
 0x24c   :  { %v153_v62 = vadd.f32 %v152_v61, %v148_v60 }
 0x24d   :  { %v173_v0 = vld [vmem:[#allocation3] sm:$0xff] }
 0x24e   :  { %v174_v1 = vsub.f32 %v173_v0, %v235_v63  ;;  %154 = vst.msk [vmem:[#allocation4] sm:$0xff] %vm56_vm7, %v153_v62 }
 0x250   :  { %236 = vlog2.f32 %v174_v1 }
 0x251   :  { %v175_v2 = vld [vmem:[#allocation5] sm:$0xff] }
 0x252   :  { %v208_v3 = vadd.f32 -1.0, %v175_v2 }
 0x254   :  { %vm183_vm10 = vcmp.gt.f32.partialorder %v208_v3, 0.0 }
 0x255   :  { %v209_v4 = vsel %vm183_vm10, 1.0, %v266_v8  ;;  %v186_v5 = vsel %vm183_vm10, %v208_v3, 1.0  ;;  %v177_v7 = vld [vmem:[#allocation4] sm:$0xff] }
 0x256   :  { %238 = vrcp.f32 %v186_v5  ;;  %193 = vst.msk [vmem:[%s350_s5] sm:$0xff] %vm56_vm7, %v209_v4  ;;  %v178_v11 = vsub.f32 %v177_v7, %v207_v52 }
 0x25a   :  { %v237_v6 = vpop.eup %236 }
 0x25b   :  { %v180_v9 = vmul.f32 0.6931472, %v237_v6 }
 0x25d   :  { %v181_v10 = vmul.f32 %v208_v3, %v180_v9 }
 0x25f   :  { %v182_v12 = vsub.f32 %v178_v11, %v181_v10 }
 0x260   :  { %v239_v13 = vpop.eup %238 }
 0x261   :  { %v188_v14 = vmul.f32 %v239_v13, %v182_v12 }
 0x263   :  { %v189_v15 = vsel %vm183_vm10, %v188_v14, 0.0 }
 0x264   :  { %v190_v16 = vsub.f32 0.0, %v189_v15 }
 0x266   :  { %v191_v17 = vmul.f32 0.5, %v190_v16 }
 0x268   :  { %192 = vst.msk [vmem:[%s349_s4] sm:$0xff] %vm56_vm7, %v191_v17 }
 0x269   :  { %202 = vsyncpa [#allocation7], 1 }

</bundles_post_ra>
